<compile_context>
chip_gen: v5e
topology: v5e:2x2
jax: 0.10.0
libtpu: 0.0.40
codegen_flags: <defaults>
</compile_context>

<pallas_src>
import jax
import jax.numpy as jnp
from jax.experimental import pallas as pl
from jax.experimental.pallas import tpu as pltpu

# ---- scaled-down, deterministic configuration (shapes implied by the module) ----
KERNEL_SIZES = (1, 2, 3, 3, 2, 1)   # args.kernel_sizes
KERNEL_NUM   = 16                   # args.kernel_num   (orig 100, scaled down)
EMBED_DIM    = 32                   # args.embed_dim    (orig 128, scaled down)
EMBED_NUM    = 50                   # vocab size
MIDDLE       = 7                    # args.middle_linear_size
CLASS_NUM    = 4                    # args.class_num
BATCH        = 2
SEQ_LEN      = 8                    # length of x[0]
N_FEATS      = 8                    # torch.cat(x[1..8], dim=1) -> (B, 8)
TOTAL        = len(KERNEL_SIZES) * KERNEL_NUM   # 96
K_MAX        = max(KERNEL_SIZES)                # 3

# ---- lane / sublane padded sizes (lane-dense matmul outputs & stores) ----
VPAD   = 64     # vocab padded to a sublane-tile multiple (one-hot contraction dim)
CPAD   = 128    # 6*KERNEL_NUM = 96 -> 128   (conv output / x1 lanes)
MIDPAD = 128    # MIDDLE = 7        -> 128   (lin1 output lanes)
TPAD   = 128    # TOTAL  = 96       -> 128   (lin2 output lanes)
OPAD   = 128    # CLASS_NUM = 4     -> 128   (logit lanes; sliced after the call)


def textcnn_kernel(ids_ref, table_ref, wconv_ref, consts_ref, x2_ref,
                   w1_ref, w2a_ref, w2b_ref, wf_ref, out_ref):
    L, D = SEQ_LEN, EMBED_DIM

    # packed (8,128) consts slab: biases + time-validity thresholds
    consts = consts_ref[...]                         # (8, 128) f32
    b_conv = consts[0:1, :]
    thr    = consts[1:2, :]                          # L - K per conv column
    b1     = consts[2:3, :]
    b2     = consts[3:4, :]
    bf     = consts[4:5, :]

    # --- embedding lookup + all 6 convs: one-hot @ table, then per-tap K=D matmuls ---
    ids  = ids_ref[...]                                            # (L, K_MAX) int32
    vcol = jax.lax.broadcasted_iota(jnp.int32, (L, VPAD), 1)       # (L, VPAD)
    table = table_ref[...]                                         # (VPAD, D) bf16

    acc = jnp.zeros((L, CPAD), jnp.float32)
    for k in range(K_MAX):
        # -1 sentinel ids (taps past the sequence end) match nothing -> zero row.
        onehot = (ids[:, k:k + 1] == vcol).astype(jnp.float32).astype(jnp.bfloat16)
        emb_k = jnp.dot(onehot, table, preferred_element_type=jnp.float32)   # (L, D)
        acc = acc + jnp.dot(emb_k.astype(jnp.bfloat16),
                            wconv_ref[k * D:(k + 1) * D, :],                 # (D, CPAD)
                            preferred_element_type=jnp.float32)              # (L, CPAD)

    convr = jnp.maximum(acc + b_conv, 0.0)                         # bias + ReLU (f32)

    # in-kernel validity mask: time index t valid iff t <= L - K (per conv column)
    t = jax.lax.broadcasted_iota(jnp.int32, (L, CPAD), 0).astype(jnp.float32)
    masked = jnp.where(t <= thr, convr, -1e30)

    # max_pool1d over time for this sequence (single sublane reduce)
    x1 = jnp.max(masked, axis=0, keepdims=True)                    # (1, CPAD)
    # TODO(synk): nn.Dropout treated as inference-mode identity (no RNG masking).

    # x2 = relu(lin1(x2))
    x2 = x2_ref[...].reshape(1, N_FEATS)
    h2 = jnp.maximum(
        jnp.dot(x2.astype(jnp.bfloat16), w1_ref[...],
                preferred_element_type=jnp.float32) + b1, 0.0)     # (1, MIDPAD)

    # x = relu(lin2(cat(x1, x2)))  -- split weights, two accumulating MXU pushes
    z = jnp.maximum(
        jnp.dot(x1.astype(jnp.bfloat16), w2a_ref[...],
                preferred_element_type=jnp.float32)
        + jnp.dot(h2.astype(jnp.bfloat16), w2b_ref[...],
                  preferred_element_type=jnp.float32) + b2, 0.0)   # (1, TPAD)

    # logit = sigmoid(fc1(x))  -- lane-dense (1, 128) store
    logit = jax.nn.sigmoid(
        jnp.dot(z.astype(jnp.bfloat16), wf_ref[...],
                preferred_element_type=jnp.float32) + bf)          # (1, OPAD)
    out_ref[...] = logit.reshape(1, 1, OPAD)


def textcnn_forward(ids, table, x2, conv_ws, conv_bs, w1, b1, w2, b2, wf, bf):
    B, L = ids.shape
    V, D = table.shape
    C = KERNEL_NUM
    KM = K_MAX

    # --- per-tap shifted token ids; -1 marks taps past the sequence end ---
    tap_cols = []
    for k in range(KM):
        shifted = jnp.concatenate(
            [ids[:, k:], jnp.full((B, k), -1, jnp.int32)], axis=1)           # (B, L)
        tap_cols.append(shifted)
    ids_i2c = jnp.stack(tap_cols, axis=-1).reshape(B * L, KM).astype(jnp.int32)

    # --- single shared embedding table (no block diagonal), sublane padded, bf16 ---
    table_p = jnp.zeros((VPAD, D), jnp.float32).at[:V].set(table).astype(jnp.bfloat16)

    # --- stacked per-tap conv weights (KM*D, CPAD), lane padded, bf16 ---
    w_all = jnp.zeros((KM, D, TOTAL), jnp.float32)
    for g, (K, w) in enumerate(zip(KERNEL_SIZES, conv_ws)):
        w_all = w_all.at[:K, :, g * C:(g + 1) * C].set(jnp.transpose(w, (1, 2, 0)))
    w_conv = jnp.pad(w_all.reshape(KM * D, TOTAL),
                     ((0, 0), (0, CPAD - TOTAL))).astype(jnp.bfloat16)

    # --- packed (8, 128) consts slab: conv bias, thresholds, b1, b2, bf ---
    def pad_row(v, fill=0.0):
        return jnp.pad(v.astype(jnp.float32), (0, 128 - v.shape[0]),
                       constant_values=fill)
    thr_row = jnp.concatenate(
        [jnp.full((C,), float(L - K), jnp.float32) for K in KERNEL_SIZES])   # (96,)
    consts = jnp.zeros((8, 128), jnp.float32)
    consts = consts.at[0].set(pad_row(jnp.concatenate(conv_bs)))
    consts = consts.at[1].set(pad_row(thr_row, fill=float(L)))   # padded cols always valid (=0)
    consts = consts.at[2].set(pad_row(b1))
    consts = consts.at[3].set(pad_row(b2))
    consts = consts.at[4].set(pad_row(bf))

    # --- pre-transposed, lane-padded linear weights (bf16 MXU operands) ---
    w1_p = jnp.pad(w1.T, ((0, 0), (0, MIDPAD - MIDDLE))).astype(jnp.bfloat16)     # (8,128)
    w2a  = jnp.pad(w2[:, :TOTAL].T,
                   ((0, CPAD - TOTAL), (0, TPAD - TOTAL))).astype(jnp.bfloat16)   # (128,128)
    w2b  = jnp.pad(w2[:, TOTAL:].T,
                   ((0, MIDPAD - MIDDLE), (0, TPAD - TOTAL))).astype(jnp.bfloat16)  # (128,128)
    wf_p = jnp.pad(wf.T,
                   ((0, TPAD - TOTAL), (0, OPAD - CLASS_NUM))).astype(jnp.bfloat16)  # (128,128)

    x2_p = x2.astype(jnp.float32).reshape(B, 1, N_FEATS)

    grid = (B,)   # one sequence per grid step; "parallel" -> both TCs on v7x
    out = pl.pallas_call(
        textcnn_kernel,
        out_shape=jax.ShapeDtypeStruct((B, 1, OPAD), jnp.float32),
        grid=grid,
        in_specs=[
            pl.BlockSpec((SEQ_LEN, KM), lambda b: (b, 0)),        # per-tap ids
            pl.BlockSpec((VPAD, D), lambda b: (0, 0)),            # embedding table
            pl.BlockSpec((KM * D, CPAD), lambda b: (0, 0)),       # stacked conv weights
            pl.BlockSpec((8, 128), lambda b: (0, 0)),             # packed consts slab
            pl.BlockSpec((1, 1, N_FEATS), lambda b: (b, 0, 0)),   # x2 row
            pl.BlockSpec((N_FEATS, MIDPAD), lambda b: (0, 0)),    # w1
            pl.BlockSpec((CPAD, TPAD), lambda b: (0, 0)),         # w2 (x1 part)
            pl.BlockSpec((MIDPAD, TPAD), lambda b: (0, 0)),       # w2 (h2 part)
            pl.BlockSpec((TPAD, OPAD), lambda b: (0, 0)),         # fc1
        ],
        out_specs=pl.BlockSpec((1, 1, OPAD), lambda b: (b, 0, 0)),
        compiler_params=pltpu.CompilerParams(dimension_semantics=("parallel",)),
    )(ids_i2c, table_p, w_conv, consts, x2_p, w1_p, w2a, w2b, wf_p)

    return out[:, 0, :CLASS_NUM]


def reference(ids, table, x2, conv_ws, conv_bs, w1, b1, w2, b2, wf, bf):
    emb = table[ids]                                         # (B, L, D)
    pooled = []
    for K, w, bb in zip(KERNEL_SIZES, conv_ws, conv_bs):
        T = SEQ_LEN - K + 1
        o = jnp.zeros((BATCH, T, KERNEL_NUM), jnp.float32)
        for k in range(K):
            o = o + jnp.einsum('btd,cd->btc', emb[:, k:k + T, :], w[:, k, :])
        o = jax.nn.relu(o + bb)
        pooled.append(jnp.max(o, axis=1))
    x1 = jnp.concatenate(pooled, axis=-1)
    h2 = jax.nn.relu(x2 @ w1.T + b1)
    x = jnp.concatenate([x1, h2], axis=-1)
    z = jax.nn.relu(x @ w2.T + b2)
    return jax.nn.sigmoid(z @ wf.T + bf)


if __name__ == "__main__":
    key = jax.random.PRNGKey(0)
    ks = jax.random.split(key, 32)

    ids = jax.random.randint(ks[0], (BATCH, SEQ_LEN), 0, EMBED_NUM, dtype=jnp.int32)
    table = 0.1 * jax.random.normal(ks[1], (EMBED_NUM, EMBED_DIM), jnp.float32)
    x2 = jax.random.normal(ks[2], (BATCH, N_FEATS), jnp.float32)

    conv_ws, conv_bs = [], []
    for i, K in enumerate(KERNEL_SIZES):
        conv_ws.append(0.1 * jax.random.normal(ks[3 + i], (KERNEL_NUM, K, EMBED_DIM), jnp.float32))
        conv_bs.append(0.1 * jax.random.normal(ks[9 + i], (KERNEL_NUM,), jnp.float32))

    w1 = 0.1 * jax.random.normal(ks[15], (MIDDLE, N_FEATS), jnp.float32)
    b1 = 0.1 * jax.random.normal(ks[16], (MIDDLE,), jnp.float32)
    w2 = 0.1 * jax.random.normal(ks[17], (TOTAL, TOTAL + MIDDLE), jnp.float32)
    b2 = 0.1 * jax.random.normal(ks[18], (TOTAL,), jnp.float32)
    wf = 0.1 * jax.random.normal(ks[19], (CLASS_NUM, TOTAL), jnp.float32)
    bf = 0.1 * jax.random.normal(ks[20], (CLASS_NUM,), jnp.float32)

    out = textcnn_forward(ids, table, x2, conv_ws, conv_bs, w1, b1, w2, b2, wf, bf)
    out = jax.block_until_ready(out)

    ref = reference(ids, table, x2, conv_ws, conv_bs, w1, b1, w2, b2, wf, bf)
    assert out.shape == (BATCH, CLASS_NUM), out.shape
    # tolerance relaxed vs the all-f32 version: MXU operands are bf16 (f32 accumulation)
    assert jnp.allclose(out, ref, atol=2e-2, rtol=2e-2), (out, ref)
    print("KERNEL_OK")
</pallas_src>

<mosaic_0001>
module attributes {stable_mosaic.version = 11 : i64} {
  func.func @textcnn_kernel(%arg0: i32, %arg1: memref<8x3xi32, #tpu.memory_space<vmem>>, %arg2: memref<64x32xbf16, #tpu.memory_space<vmem>>, %arg3: memref<96x128xbf16, #tpu.memory_space<vmem>>, %arg4: memref<8x128xf32, #tpu.memory_space<vmem>>, %arg5: memref<1x1x8xf32, #tpu.memory_space<vmem>>, %arg6: memref<8x128xbf16, #tpu.memory_space<vmem>>, %arg7: memref<128x128xbf16, #tpu.memory_space<vmem>>, %arg8: memref<128x128xbf16, #tpu.memory_space<vmem>>, %arg9: memref<128x128xbf16, #tpu.memory_space<vmem>>, %arg10: memref<1x1x128xf32, #tpu.memory_space<vmem>>) attributes {dimension_semantics = [#tpu.dimension_semantics<parallel>], iteration_bounds = array<i64: 2>, scalar_prefetch = 0 : i64, scratch_operands = 0 : i64, tpu.core_type = #tpu.core_type<tc>, window_params = [{transform_indices = @transform_0, window_bounds = array<i64: 8, 3>}, {pipeline_mode = #tpu.pipeline_mode<synchronous>, transform_indices = @transform_1, window_bounds = array<i64: 64, 32>}, {pipeline_mode = #tpu.pipeline_mode<synchronous>, transform_indices = @transform_2, window_bounds = array<i64: 96, 128>}, {pipeline_mode = #tpu.pipeline_mode<synchronous>, transform_indices = @transform_3, window_bounds = array<i64: 8, 128>}, {transform_indices = @transform_4, window_bounds = array<i64: 1, 1, 8>}, {pipeline_mode = #tpu.pipeline_mode<synchronous>, transform_indices = @transform_5, window_bounds = array<i64: 8, 128>}, {pipeline_mode = #tpu.pipeline_mode<synchronous>, transform_indices = @transform_6, window_bounds = array<i64: 128, 128>}, {pipeline_mode = #tpu.pipeline_mode<synchronous>, transform_indices = @transform_7, window_bounds = array<i64: 128, 128>}, {pipeline_mode = #tpu.pipeline_mode<synchronous>, transform_indices = @transform_8, window_bounds = array<i64: 128, 128>}, {transform_indices = @transform_9, window_bounds = array<i64: 1, 1, 128>}]} {
    %c0 = arith.constant 0 : index
    %c0_0 = arith.constant 0 : index
    %0 = vector.load %arg4[%c0, %c0_0] : memref<8x128xf32, #tpu.memory_space<vmem>>, vector<8x128xf32>
    %1 = vector.extract_strided_slice %0 {offsets = [0, 0], sizes = [1, 128], strides = [1, 1]} : vector<8x128xf32> to vector<1x128xf32>
    %2 = vector.extract_strided_slice %0 {offsets = [1, 0], sizes = [1, 128], strides = [1, 1]} : vector<8x128xf32> to vector<1x128xf32>
    %3 = vector.extract_strided_slice %0 {offsets = [2, 0], sizes = [1, 128], strides = [1, 1]} : vector<8x128xf32> to vector<1x128xf32>
    %4 = vector.extract_strided_slice %0 {offsets = [3, 0], sizes = [1, 128], strides = [1, 1]} : vector<8x128xf32> to vector<1x128xf32>
    %5 = vector.extract_strided_slice %0 {offsets = [4, 0], sizes = [1, 128], strides = [1, 1]} : vector<8x128xf32> to vector<1x128xf32>
    %c0_1 = arith.constant 0 : index
    %c0_2 = arith.constant 0 : index
    %6 = vector.load %arg1[%c0_1, %c0_2] : memref<8x3xi32, #tpu.memory_space<vmem>>, vector<8x3xi32>
    %7 = tpu.iota {dimensions = array<i32: 1>} : vector<8x64xi32>
    %c0_3 = arith.constant 0 : index
    %c0_4 = arith.constant 0 : index
    %8 = vector.load %arg2[%c0_3, %c0_4] : memref<64x32xbf16, #tpu.memory_space<vmem>>, vector<64x32xbf16>
    %cst = arith.constant 0.000000e+00 : f32
    %9 = vector.broadcast %cst : f32 to vector<8x128xf32>
    %10 = vector.extract_strided_slice %6 {offsets = [0, 0], sizes = [8, 1], strides = [1, 1]} : vector<8x3xi32> to vector<8x1xi32>
    %11 = vector.broadcast %10 : vector<8x1xi32> to vector<8x64xi32>
    %12 = arith.cmpi eq, %11, %7 : vector<8x64xi32>
    %13 = arith.extui %12 : vector<8x64xi1> to vector<8x64xi32>
    %14 = arith.sitofp %13 : vector<8x64xi32> to vector<8x64xf32>
    %15 = arith.truncf %14 : vector<8x64xf32> to vector<8x64xbf16>
    %cst_5 = arith.constant dense<0.000000e+00> : vector<8x32xf32>
    %16 = tpu.matmul %15, %8, %cst_5 {dimension_numbers = #tpu.dot_dimension_numbers<[1], [0], [0], [1], [0, 0, 1, 1], [], []>} : vector<8x64xbf16>, vector<64x32xbf16>, vector<8x32xf32> -> vector<8x32xf32>
    %17 = arith.truncf %16 : vector<8x32xf32> to vector<8x32xbf16>
    %c0_6 = arith.constant 0 : index
    %c0_7 = arith.constant 0 : index
    %18 = vector.load %arg3[%c0_6, %c0_7] : memref<96x128xbf16, #tpu.memory_space<vmem>>, vector<32x128xbf16>
    %cst_8 = arith.constant dense<0.000000e+00> : vector<8x128xf32>
    %19 = tpu.matmul %17, %18, %cst_8 {dimension_numbers = #tpu.dot_dimension_numbers<[1], [0], [0], [1], [0, 0, 1, 1], [], []>} : vector<8x32xbf16>, vector<32x128xbf16>, vector<8x128xf32> -> vector<8x128xf32>
    %20 = arith.addf %9, %19 : vector<8x128xf32>
    %21 = vector.extract_strided_slice %6 {offsets = [0, 1], sizes = [8, 1], strides = [1, 1]} : vector<8x3xi32> to vector<8x1xi32>
    %22 = vector.broadcast %21 : vector<8x1xi32> to vector<8x64xi32>
    %23 = arith.cmpi eq, %22, %7 : vector<8x64xi32>
    %24 = arith.extui %23 : vector<8x64xi1> to vector<8x64xi32>
    %25 = arith.sitofp %24 : vector<8x64xi32> to vector<8x64xf32>
    %26 = arith.truncf %25 : vector<8x64xf32> to vector<8x64xbf16>
    %cst_9 = arith.constant dense<0.000000e+00> : vector<8x32xf32>
    %27 = tpu.matmul %26, %8, %cst_9 {dimension_numbers = #tpu.dot_dimension_numbers<[1], [0], [0], [1], [0, 0, 1, 1], [], []>} : vector<8x64xbf16>, vector<64x32xbf16>, vector<8x32xf32> -> vector<8x32xf32>
    %28 = arith.truncf %27 : vector<8x32xf32> to vector<8x32xbf16>
    %c32 = arith.constant 32 : index
    %c0_10 = arith.constant 0 : index
    %29 = vector.load %arg3[%c32, %c0_10] : memref<96x128xbf16, #tpu.memory_space<vmem>>, vector<32x128xbf16>
    %cst_11 = arith.constant dense<0.000000e+00> : vector<8x128xf32>
    %30 = tpu.matmul %28, %29, %cst_11 {dimension_numbers = #tpu.dot_dimension_numbers<[1], [0], [0], [1], [0, 0, 1, 1], [], []>} : vector<8x32xbf16>, vector<32x128xbf16>, vector<8x128xf32> -> vector<8x128xf32>
    %31 = arith.addf %20, %30 : vector<8x128xf32>
    %32 = vector.extract_strided_slice %6 {offsets = [0, 2], sizes = [8, 1], strides = [1, 1]} : vector<8x3xi32> to vector<8x1xi32>
    %33 = vector.broadcast %32 : vector<8x1xi32> to vector<8x64xi32>
    %34 = arith.cmpi eq, %33, %7 : vector<8x64xi32>
    %35 = arith.extui %34 : vector<8x64xi1> to vector<8x64xi32>
    %36 = arith.sitofp %35 : vector<8x64xi32> to vector<8x64xf32>
    %37 = arith.truncf %36 : vector<8x64xf32> to vector<8x64xbf16>
    %cst_12 = arith.constant dense<0.000000e+00> : vector<8x32xf32>
    %38 = tpu.matmul %37, %8, %cst_12 {dimension_numbers = #tpu.dot_dimension_numbers<[1], [0], [0], [1], [0, 0, 1, 1], [], []>} : vector<8x64xbf16>, vector<64x32xbf16>, vector<8x32xf32> -> vector<8x32xf32>
    %39 = arith.truncf %38 : vector<8x32xf32> to vector<8x32xbf16>
    %c64 = arith.constant 64 : index
    %c0_13 = arith.constant 0 : index
    %40 = vector.load %arg3[%c64, %c0_13] : memref<96x128xbf16, #tpu.memory_space<vmem>>, vector<32x128xbf16>
    %cst_14 = arith.constant dense<0.000000e+00> : vector<8x128xf32>
    %41 = tpu.matmul %39, %40, %cst_14 {dimension_numbers = #tpu.dot_dimension_numbers<[1], [0], [0], [1], [0, 0, 1, 1], [], []>} : vector<8x32xbf16>, vector<32x128xbf16>, vector<8x128xf32> -> vector<8x128xf32>
    %42 = arith.addf %31, %41 : vector<8x128xf32>
    %43 = vector.broadcast %1 : vector<1x128xf32> to vector<8x128xf32>
    %44 = arith.addf %42, %43 : vector<8x128xf32>
    %cst_15 = arith.constant 0.000000e+00 : f32
    %45 = vector.broadcast %cst_15 : f32 to vector<8x128xf32>
    %46 = arith.maximumf %44, %45 : vector<8x128xf32>
    %47 = tpu.iota {dimensions = array<i32: 0>} : vector<8x128xi32>
    %48 = arith.sitofp %47 : vector<8x128xi32> to vector<8x128xf32>
    %49 = vector.broadcast %2 : vector<1x128xf32> to vector<8x128xf32>
    %50 = arith.cmpf ole, %48, %49 : vector<8x128xf32>
    %cst_16 = arith.constant -1.000000e+30 : f32
    %51 = vector.broadcast %cst_16 : f32 to vector<8x128xf32>
    %52 = arith.select %50, %46, %51 : vector<8x128xi1>, vector<8x128xf32>
    %cst_17 = arith.constant dense<0xFF800000> : vector<128xf32>
    %53 = vector.multi_reduction <maximumf>, %52, %cst_17 [0] : vector<8x128xf32> to vector<128xf32>
    %54 = vector.shape_cast %53 : vector<128xf32> to vector<1x128xf32>
    %c0_18 = arith.constant 0 : index
    %c0_19 = arith.constant 0 : index
    %c0_20 = arith.constant 0 : index
    %55 = vector.load %arg5[%c0_18, %c0_19, %c0_20] : memref<1x1x8xf32, #tpu.memory_space<vmem>>, vector<1x1x8xf32>
    %56 = vector.shape_cast %55 : vector<1x1x8xf32> to vector<1x8xf32>
    %57 = arith.truncf %56 : vector<1x8xf32> to vector<1x8xbf16>
    %c0_21 = arith.constant 0 : index
    %c0_22 = arith.constant 0 : index
    %58 = vector.load %arg6[%c0_21, %c0_22] : memref<8x128xbf16, #tpu.memory_space<vmem>>, vector<8x128xbf16>
    %cst_23 = arith.constant dense<0.000000e+00> : vector<1x128xf32>
    %59 = tpu.matmul %57, %58, %cst_23 {dimension_numbers = #tpu.dot_dimension_numbers<[1], [0], [0], [1], [0, 0, 1, 1], [], []>} : vector<1x8xbf16>, vector<8x128xbf16>, vector<1x128xf32> -> vector<1x128xf32>
    %60 = arith.addf %59, %3 : vector<1x128xf32>
    %cst_24 = arith.constant 0.000000e+00 : f32
    %61 = vector.broadcast %cst_24 : f32 to vector<1x128xf32>
    %62 = arith.maximumf %60, %61 : vector<1x128xf32>
    %63 = arith.truncf %54 : vector<1x128xf32> to vector<1x128xbf16>
    %c0_25 = arith.constant 0 : index
    %c0_26 = arith.constant 0 : index
    %64 = vector.load %arg7[%c0_25, %c0_26] : memref<128x128xbf16, #tpu.memory_space<vmem>>, vector<128x128xbf16>
    %cst_27 = arith.constant dense<0.000000e+00> : vector<1x128xf32>
    %65 = tpu.matmul %63, %64, %cst_27 {dimension_numbers = #tpu.dot_dimension_numbers<[1], [0], [0], [1], [0, 0, 1, 1], [], []>} : vector<1x128xbf16>, vector<128x128xbf16>, vector<1x128xf32> -> vector<1x128xf32>
    %66 = arith.truncf %62 : vector<1x128xf32> to vector<1x128xbf16>
    %c0_28 = arith.constant 0 : index
    %c0_29 = arith.constant 0 : index
    %67 = vector.load %arg8[%c0_28, %c0_29] : memref<128x128xbf16, #tpu.memory_space<vmem>>, vector<128x128xbf16>
    %cst_30 = arith.constant dense<0.000000e+00> : vector<1x128xf32>
    %68 = tpu.matmul %66, %67, %cst_30 {dimension_numbers = #tpu.dot_dimension_numbers<[1], [0], [0], [1], [0, 0, 1, 1], [], []>} : vector<1x128xbf16>, vector<128x128xbf16>, vector<1x128xf32> -> vector<1x128xf32>
    %69 = arith.addf %65, %68 : vector<1x128xf32>
    %70 = arith.addf %69, %4 : vector<1x128xf32>
    %cst_31 = arith.constant 0.000000e+00 : f32
    %71 = vector.broadcast %cst_31 : f32 to vector<1x128xf32>
    %72 = arith.maximumf %70, %71 : vector<1x128xf32>
    %73 = arith.truncf %72 : vector<1x128xf32> to vector<1x128xbf16>
    %c0_32 = arith.constant 0 : index
    %c0_33 = arith.constant 0 : index
    %74 = vector.load %arg9[%c0_32, %c0_33] : memref<128x128xbf16, #tpu.memory_space<vmem>>, vector<128x128xbf16>
    %cst_34 = arith.constant dense<0.000000e+00> : vector<1x128xf32>
    %75 = tpu.matmul %73, %74, %cst_34 {dimension_numbers = #tpu.dot_dimension_numbers<[1], [0], [0], [1], [0, 0, 1, 1], [], []>} : vector<1x128xbf16>, vector<128x128xbf16>, vector<1x128xf32> -> vector<1x128xf32>
    %76 = arith.addf %75, %5 : vector<1x128xf32>
    %77 = arith.negf %76 : vector<1x128xf32>
    %78 = math.exp %77 : vector<1x128xf32>
    %cst_35 = arith.constant 1.000000e+00 : f32
    %79 = vector.broadcast %cst_35 : f32 to vector<1x128xf32>
    %80 = arith.addf %79, %78 : vector<1x128xf32>
    %81 = arith.divf %79, %80 : vector<1x128xf32>
    %82 = vector.shape_cast %81 : vector<1x128xf32> to vector<1x1x128xf32>
    %c0_36 = arith.constant 0 : index
    %c0_37 = arith.constant 0 : index
    %c0_38 = arith.constant 0 : index
    %83 = vector.load %arg10[%c0_36, %c0_37, %c0_38] : memref<1x1x128xf32, #tpu.memory_space<vmem>>, vector<1x1x128xf32>
    tpu.vector_store %arg10[%c0_36, %c0_37, %c0_38], %82 {strides = array<i32>} : memref<1x1x128xf32, #tpu.memory_space<vmem>>, vector<1x1x128xf32>,
    return
  }
  func.func @transform_0(%arg0: i32) -> (i32, i32) {
    %c0_i32 = arith.constant 0 : i32
    %c0_i32_0 = arith.constant 0 : i32
    return %arg0, %c0_i32 : i32, i32
  }
  func.func @transform_1(%arg0: i32) -> (i32, i32) {
    %c0_i32 = arith.constant 0 : i32
    %c0_i32_0 = arith.constant 0 : i32
    %c0_i32_1 = arith.constant 0 : i32
    return %c0_i32, %c0_i32_0 : i32, i32
  }
  func.func @transform_2(%arg0: i32) -> (i32, i32) {
    %c0_i32 = arith.constant 0 : i32
    %c0_i32_0 = arith.constant 0 : i32
    %c0_i32_1 = arith.constant 0 : i32
    return %c0_i32, %c0_i32_0 : i32, i32
  }
  func.func @transform_3(%arg0: i32) -> (i32, i32) {
    %c0_i32 = arith.constant 0 : i32
    %c0_i32_0 = arith.constant 0 : i32
    %c0_i32_1 = arith.constant 0 : i32
    return %c0_i32, %c0_i32_0 : i32, i32
  }
  func.func @transform_4(%arg0: i32) -> (i32, i32, i32) {
    %c0_i32 = arith.constant 0 : i32
    %c0_i32_0 = arith.constant 0 : i32
    %c0_i32_1 = arith.constant 0 : i32
    return %arg0, %c0_i32, %c0_i32_0 : i32, i32, i32
  }
  func.func @transform_5(%arg0: i32) -> (i32, i32) {
    %c0_i32 = arith.constant 0 : i32
    %c0_i32_0 = arith.constant 0 : i32
    %c0_i32_1 = arith.constant 0 : i32
    return %c0_i32, %c0_i32_0 : i32, i32
  }
  func.func @transform_6(%arg0: i32) -> (i32, i32) {
    %c0_i32 = arith.constant 0 : i32
    %c0_i32_0 = arith.constant 0 : i32
    %c0_i32_1 = arith.constant 0 : i32
    return %c0_i32, %c0_i32_0 : i32, i32
  }
  func.func @transform_7(%arg0: i32) -> (i32, i32) {
    %c0_i32 = arith.constant 0 : i32
    %c0_i32_0 = arith.constant 0 : i32
    %c0_i32_1 = arith.constant 0 : i32
    return %c0_i32, %c0_i32_0 : i32, i32
  }
  func.func @transform_8(%arg0: i32) -> (i32, i32) {
    %c0_i32 = arith.constant 0 : i32
    %c0_i32_0 = arith.constant 0 : i32
    %c0_i32_1 = arith.constant 0 : i32
    return %c0_i32, %c0_i32_0 : i32, i32
  }
  func.func @transform_9(%arg0: i32) -> (i32, i32, i32) {
    %c0_i32 = arith.constant 0 : i32
    %c0_i32_0 = arith.constant 0 : i32
    %c0_i32_1 = arith.constant 0 : i32
    return %arg0, %c0_i32, %c0_i32_0 : i32, i32, i32
  }
}

</mosaic_0001>

<bundles_post_ra>
// kernel: tpu_custom_call.1
= control target key start
LH: loop header
LB: loop body
LE: loop exit
PB: predicated region body
PF: predicated region fallthrough
CT: control target
= control target key end

     0   :  { %s1754_s0 = inlined_call_operand.vmem [shape: s32[16,3], index: 0, kind: input, shape index: {}]   ;;  %s1755_s1 = inlined_call_operand.vmem [shape: bf16[64,32], index: 1, kind: input, shape index: {}]   ;;  %s1756_s2 = inlined_call_operand.vmem [shape: bf16[96,128], index: 2, kind: input, shape index: {}]   ;;  %s1757_s3 = inlined_call_operand.hbm [shape: f32[8,128], index: 3, kind: input, shape index: {}]   ;;  %s1758_s4 = inlined_call_operand.vmem [shape: f32[2,1,8], index: 4, kind: input, shape index: {}]   ;;  %s1759_s5 = inlined_call_operand.vmem [shape: bf16[8,128], index: 5, kind: input, shape index: {}]   ;;  %s1760_s6 = inlined_call_operand.hbm [shape: bf16[128,128], index: 6, kind: input, shape index: {}]   ;;  %s1761_s7 = inlined_call_operand.hbm [shape: bf16[128,128], index: 7, kind: input, shape index: {}]   ;;  %s1762_s8 = inlined_call_operand.hbm [shape: bf16[128,128], index: 8, kind: input, shape index: {}]   ;;  %s1763_s9 = inlined_call_operand.hbm [shape: f32[2,1,128], index: 9, kind: output, shape index: {}]  }
   0x1   :  { %1767 = sst [smem:[#allocation18_spill]] %s1757_s3 }
   0x2   :  { %1768 = sst [smem:[#allocation19_spill]] %s1760_s6 }
   0x3   :  { %14 = vsyncpa [#allocation3], 0 }
   0x4   :  { %15 = vsyncpa [#allocation6], 0 }
   0x5   :  { %16 = vsyncpa [#allocation9], 0 }
   0x6   :  { %17 = vsyncpa [#allocation4], 0 }
   0x7   :  { %19 = vsyncpa [#allocation4 + $0x1], 0  ;;  %s1580_s30 = smov 0   ;;  %s1582_s10 = smov 0  }
   0x8   :  { %s1584_s11 = smov 0   ;;  %s1586_s12 = smov 0  }
   0x9 LB: > { %1769 = sst [smem:[#allocation15_spill]] %s1514_s11  ;;  %s1601_s13 = sadd.s32 4294967295, %s1518_s12   ;;  %s1518_s12 = sphi %s1586_s12, %s1778_s12   ;;  %s1514_s11 = sphi %s1584_s11, %s1780_s11   ;;  %s1510_s10 = sphi %s1582_s10, %s1782_s10   ;;  %s1506_s30 = sphi %s1580_s30, %s1781_s30  }
   0xa   : > { %s1035_s14 = sadd.s32 4294967294, %s1518_s12   ;;  %s1605_s15 = sadd.s32 1, %s1518_s12  }
   0xb   : > { %1770 = sst [smem:[#allocation16_spill]] %s1605_s15  ;;  %s231_s16 = sadd.s32 1, %s1514_s11 }
   0xc   : > { %s228_s17 = ssub.s32 %s1518_s12, %s1605_s15  ;;  %p241_p0 = scmp.ne.s32.totalorder %s1514_s11, %s1510_s10 }
   0xd   : > { %p229_p1 = scmp.eq.s32.totalorder %s228_s17, 0  ;;  %p242_p2 = scmp.eq.s32.totalorder %s1601_s13, 1 }
   0xe   : > { %p247_p3 = scmp.ne.s32.totalorder %s1510_s10, %s1506_s30  ;;  %p248_p4 = scmp.eq.s32.totalorder %s1035_s14, 1 }
   0xf   : > { %s1616_s18 = scalar_select %p229_p1, %s1514_s11, %s231_s16  }
  0x10   : > { %p1618_p5 = por %p242_p2, %p241_p0  ;;  %p1622_p6 = por %p248_p4, %p247_p3 }
  0x11   : > { %1771 = sst [smem:[#allocation17_spill]] %s1616_s18  ;;  %p1036_p7 = scmp.ge.s32.totalorder %s1518_s12, 1 }
  0x12   : > { %p255_p8 = scmp.lt.s32.totalorder %s1518_s12, 3  ;;  %p1266_p9 = scmp.eq.s32.totalorder %s1601_s13, 0 }
  0x13   : > { %s1775_s6 = sld [smem:[#allocation19_spill]]  ;;  %s1520_s25 = smov [#allocation5]  }
  0x14   : > { %p1629_p10 = pnand %p1036_p7, %p255_p8  ;;  %s289_s26 = sshll.u32 %s1520_s25, 4  ;;  %s290_s26 = int_to_ptr.vmem [resolvable:$true] %s289_s26 }
  0x15   : > { %s1777_s3 = sld [smem:[#allocation18_spill]]  ;;  %s1521_s16 = smov 64  }
  0x16   : > { %p1249_p11 = pneg %p1629_p10  ;;  %s1522_s17 = smov 4  }
  0x17   : > { %s1523_s22 = smov [#allocation2]   ;;  %s301_s18 = sshll.u32 %s1761_s7, 4  ;;  %s302_s18 = int_to_ptr.hbm [resolvable:$true] %s301_s18 }
  0x18   : > { %p1640_p12 = pnand %p1266_p9, %p1249_p11  ;;  %s275_s23 = sshll.u32 %s1523_s22, 4  ;;  %s276_s23 = int_to_ptr.vmem [resolvable:$true] %s275_s23 }
  0x19   : > { %s287_s24 = sshll.u32 %s1775_s6, 4  ;;  %s1524_s11 = smov [#allocation7]   ;;  %s288_s24 = int_to_ptr.hbm [resolvable:$true] %s287_s24 }
  0x1a   : > { %1255 = dma.hbm_to_vmem [thread:$0]  (!%p1640_p12), %s288_s24, 1024, %s290_s26, [#allocation6], %s1521_s16, %s1521_s16, %s1522_s17  }
  0x1b   : > { %s273_s14 = sshll.u32 %s1777_s3, 4  ;;  %s315_s3 = sshll.u32 %s1762_s8, 4  ;;  %s274_s14 = int_to_ptr.hbm [resolvable:$true] %s273_s14  ;;  %s316_s3 = int_to_ptr.hbm [resolvable:$true] %s315_s3 }
  0x1c   : > { %1252 = dma.hbm_to_vmem [thread:$0]  (!%p1640_p12), %s274_s14, 128, %s276_s23, [#allocation3]  }
  0x1d   : > { %s303_s15 = sshll.u32 %s1524_s11, 4  ;;  %s1525_s24 = smov [#allocation8]   ;;  %s304_s15 = int_to_ptr.vmem [resolvable:$true] %s303_s15 }
  0x1e   : > { %1258 = dma.hbm_to_vmem [thread:$0]  (!%p1640_p12), %s302_s18, 1024, %s304_s15, [#allocation6], %s1521_s16, %s1521_s16, %s1522_s17  }
  0x1f   : > { %s317_s26 = sshll.u32 %s1525_s24, 4  ;;  %346 = sbr.rel (%p1629_p10) target bundleno = 769 (0x301), region = 56  ;;  %s318_s26 = int_to_ptr.vmem [resolvable:$true] %s317_s26 }
  0x20   : > { %1261 = dma.hbm_to_vmem [thread:$0]  (!%p1640_p12), %s316_s3, 1024, %s318_s26, [#allocation9], %s1521_s16, %s1521_s16, %s1522_s17  }
  0x24   : > { %1489 = dma.done.wait (%p1266_p9), [#allocation3], 128  }
  0x25   : > { %1491 = vsyncadd (%p1266_p9), [#allocation3], 4294967168 }
  0x26   : > { %1493 = dma.done.wait (%p1266_p9), [#allocation6], 2048  }
  0x27   : > { %1495 = vsyncadd (%p1266_p9), [#allocation6], 4294965248 }
  0x28   : > { %1497 = dma.done.wait (%p1266_p9), [#allocation9], 1024  }
  0x29   : > { %1499 = vsyncadd (%p1266_p9), [#allocation9], 4294966272  ;;  %p399_p13 = scmp.lt.s32.totalorder %s1601_s13, 1  ;;  %v1526_v0 = vmov 0   ;;  %v1527_v1 = vmov 1   ;;  %v1200_v3 = vld [vmem:[%s1755_s1 + $0x18] sm:$0xff]  ;;  %v409_v9 = vlaneseq  ;;  %s926_s26 = scalar_lea.hbm %s1763_s9, %s1601_s13 }
  0x2a   : > { %1317 = vset.pattern.permute.xlu0 %v1526_v0  ;;  %1319 = vset.pattern.permute.xlu1 %v1527_v1  ;;  %v1199_v4 = vld [vmem:[%s1755_s1 + $0x10] sm:$0xff]  ;;  %v1198_v5 = vld [vmem:[%s1755_s1 + $0x8] sm:$0xff]  ;;  %v1528_v6 = vmov 2   ;;  %v1197_v7 = vld [vmem:[%s1755_s1] sm:$0xff]  ;;  %v1529_v13 = vmov 0.0   ;;  %vm450_vm2 = vcmask 523264  }
  0x2b   : > { %s1677_s3 = scalar_select %p399_p13, %s1601_s13, 1  ;;  %458 = vmatpush.bf16.msra.mxu0 %v1200_v3  ;;  %486 = vmatpush.bf16.msra.mxu1 %v1200_v3  ;;  %v1202_v8 = vld [vmem:[%s1756_s2 + $0x8] sm:$0xff]  ;;  %v410_v10 = vand.u32 127, %v409_v9  ;;  %v1201_v21 = vld [vmem:[%s1756_s2] sm:$0xff]  ;;  %v1204_v22 = vld [vmem:[%s1756_s2 + $0x18] sm:$0xff]  ;;  %vm639_vm4 = vcmask 1043456  }
  0x2c   : > { %571 = vmatpush.bf16.msra.mxu2 %v1200_v3  ;;  %550 = vmatpush.bf16.msra.mxu3 %v1202_v8  ;;  %v1206_v23 = vld [vmem:[%s1756_s2 + $0x28] sm:$0xff]  ;;  %v1203_v24 = vld [vmem:[%s1756_s2 + $0x10] sm:$0xff]  ;;  %v1205_v25 = vld [vmem:[%s1756_s2 + $0x20] sm:$0xff]  ;;  %vm512_vm5 = vcmask 261120   ;;  %vm635_vm6 = vcmask 64512   ;;  %v618_v1 = vshrl.u32 %v409_v9, 7 }
  0x2d   : > { %s1047_s6 = sshll.u32 %s1677_s3, 3  ;;  %v631_v26 = vld [vmem:[%s1759_s5] sm:$0xf]  ;;  %s405_s28 = scalar_lea.vmem %s1758_s4, %s1677_s3  ;;  %v1221_v41 = vld [vmem:[#allocation7 + $0x30] sm:$0xff]  ;;  %v1220_v43 = vld [vmem:[#allocation7 + $0x28] sm:$0xff] }
  0x2e   : > { %s402_s18 = scalar_lea.vmem %s1754_s0, %s1047_s6  ;;  %v641_v27 = vsel %vm639_vm4, %v631_v26, 0  ;;  %v629_v34 = vld [vmem:[%s405_s28] sm:$0x1]  ;;  %v1213_v42 = vld [vmem:[#allocation5 + $0x30] sm:$0xff]  ;;  %v1212_v44 = vld [vmem:[#allocation5 + $0x28] sm:$0xff]  ;;  %v619_v8 = vcvt.s32.f32 %v618_v1  ;;  %s397_s3 = sand.u32 1, %s1510_s10  }
  0x2f   : > { %v408_v2 = vld [vmem:[%s402_s18] sm:$0xff]  ;;  %459 = vmatpush.bf16.msra.mxu0 %v1199_v4  ;;  %487 = vmatpush.bf16.msra.mxu1 %v1199_v4  ;;  %v630_v35 = vpack.c.bf16 %v629_v34, %v629_v34  ;;  %v1219_v45 = vld [vmem:[#allocation7 + $0x20] sm:$0xff]  ;;  %v1217_v49 = vld [vmem:[#allocation7 + $0x10] sm:$0xff]  ;;  %s398_s6 = scalar_lea.vmem [#allocation10], %s397_s3  ;;  %s930_s15 = sshll.u32 %s926_s26, 4  ;;  %s931_s15 = int_to_ptr.hbm [resolvable:$true] %s930_s15 }
  0x30   : > { %420 = vperm.xlu0 %1317, %v408_v2   ;;  %473 = vperm.xlu1 %1319, %v408_v2   ;;  %v1222_v39 = vld [vmem:[#allocation7 + $0x38] sm:$0xff]  ;;  %v1211_v46 = vld [vmem:[#allocation5 + $0x20] sm:$0xff]  ;;  %v1209_v50 = vld [vmem:[#allocation5 + $0x10] sm:$0xff]  ;;  %s928_s11 = sshll.u32 %s398_s6, 4  ;;  %s918_s18 = scalar_lea.sflag [#allocation4], %s397_s3  ;;  %s929_s11 = int_to_ptr.vmem [resolvable:$true] %s928_s11 }
  0x31   : > { %572 = vmatpush.bf16.msra.mxu2 %v1199_v4  ;;  %551 = vmatpush.bf16.msra.mxu3 %v1201_v21  ;;  %v1214_v40 = vld [vmem:[#allocation5 + $0x38] sm:$0xff]  ;;  %v1216_v52 = vld [vmem:[#allocation7 + $0x8] sm:$0xff]  ;;  %v1215_v54 = vld [vmem:[#allocation7] sm:$0xff]  ;;  %s1458_s13 = sshra.s32 %s931_s15, 4  ;;  %s1464_s16 = scalar_lea.hbm %s1763_s9, 2  ;;  %s1459_s13 = int_to_ptr.hbm [resolvable:$true] %s1458_s13 }
  0x32   : > { %v1218_v47 = vld [vmem:[#allocation7 + $0x18] sm:$0xff]  ;;  %v1208_v53 = vld [vmem:[#allocation5 + $0x8] sm:$0xff]  ;;  %v1207_v55 = vld [vmem:[#allocation5] sm:$0xff]  ;;  %s1460_s21 = scalar_lea.hbm %s1459_s13, 1  ;;  %p1465_p3 = scmp.lt.s32.totalorder %s1459_s13, %s1763_s9 }
  0x33   : > { %460 = vmatpush.bf16.msra.mxu0 %v1198_v5  ;;  %488 = vmatpush.bf16.msra.mxu1 %v1198_v5  ;;  %v1210_v48 = vld [vmem:[#allocation5 + $0x18] sm:$0xff]  ;;  %v1229_v62 = vld [vmem:[#allocation8 + $0x30] sm:$0xff]  ;;  %v1224_v26 = vld [vmem:[#allocation8 + $0x8] sm:$0xff]  ;;  %p1461_p0 = scmp.ne.s32.totalorder %s1459_s13, %s1460_s21  ;;  %p1466_p4 = scmp.lt.s32.totalorder %s1464_s16, %s1460_s21 }
  0x34   : > { %v407_v58 = vld [vmem:[#allocation2] sm:$0xff] }
  0x35   : > { %573 = vmatpush.bf16.msra.mxu2 %v1198_v5  ;;  %606 = vmatpush.bf16.msrb.mxu3 %v1206_v23  ;;  %v1230_v59 = vld [vmem:[#allocation8 + $0x38] sm:$0xff]  ;;  %v633_v60 = vrot.slane %v407_v58, 2  ;;  %v614_v5 = vperm.slane %v407_v58, 0  ;;  %p1462_p1 = pnand %p1461_p0, %p1618_p5  ;;  %p1467_p7 = por %p1466_p4, %p1465_p3 }
  0x37   : > { %461 = vmatpush.bf16.msra.mxu0 %v1197_v7  ;;  %489 = vmatpush.bf16.msra.mxu1 %v1197_v7  ;;  %p1463_p2 = pneg %p1462_p1 }
  0x38   : > { %1318 = vset.pattern.permute.xlu0 %v1528_v6 }
  0x39   : > { %558 = vperm.xlu0 %1318, %v408_v2   ;;  %574 = vmatpush.bf16.msra.mxu2 %v1197_v7  ;;  %v1228_v2 = vld [vmem:[#allocation8 + $0x28] sm:$0xff]  ;;  %p1468_p8 = pnand %p1467_p7, %p1463_p2 }
  0x3a   : > { %607 = vmatpush.bf16.msrb.mxu3 %v1205_v25  ;;  %v1225_v25 = vld [vmem:[#allocation8 + $0x10] sm:$0xff] }
  0x3b   : > { %522 = vmatpush.bf16.msrb.mxu0 %v1204_v22  ;;  %739 = vmatpush.bf16.msrb.mxu1 %v1222_v39 }
  0x3d   : > { %800 = vmatpush.bf16.msrb.mxu2 %v1214_v40 }
  0x3f   : > { %523 = vmatpush.bf16.msrb.mxu0 %v1203_v24  ;;  %740 = vmatpush.bf16.msrb.mxu1 %v1221_v41  ;;  %v1226_v24 = vld [vmem:[#allocation8 + $0x18] sm:$0xff] }
  0x41   : > { %801 = vmatpush.bf16.msrb.mxu2 %v1213_v42 }
  0x43   : > { %741 = vmatpush.bf16.msrb.mxu1 %v1220_v43 }
  0x45   : > { %802 = vmatpush.bf16.msrb.mxu2 %v1212_v44 }
  0x47   : > { %742 = vmatpush.bf16.msrb.mxu1 %v1219_v45 }
  0x49   : > { %803 = vmatpush.bf16.msrb.mxu2 %v1211_v46 }
  0x4b   : > { %743 = vmatpush.bf16.msrb.mxu1 %v1218_v47 }
  0x4d   : > { %804 = vmatpush.bf16.msrb.mxu2 %v1210_v48 }
  0x4f   : > { %744 = vmatpush.bf16.msrb.mxu1 %v1217_v49 }
  0x51   : > { %805 = vmatpush.bf16.msrb.mxu2 %v1209_v50 }
  0x53   : > { %745 = vmatpush.bf16.msrb.mxu1 %v1216_v52 }
  0x55   : > { %806 = vmatpush.bf16.msrb.mxu2 %v1208_v53 }
  0x57   : > { %746 = vmatpush.bf16.msrb.mxu1 %v1215_v54 }
  0x59   : > { %807 = vmatpush.bf16.msrb.mxu2 %v1207_v55 }
  0xa2   : > { %v421_v11 = vpop.permute.xlu0 %420  ;;  %v474_v12 = vpop.permute.xlu1 %473 }
  0xa3   : > { %vm422_vm0 = vcmp.eq.s32.totalorder %v421_v11, %v410_v10  ;;  %vm475_vm1 = vcmp.eq.s32.totalorder %v474_v12, %v410_v10  ;;  %v1227_v11 = vld [vmem:[#allocation8 + $0x20] sm:$0xff] }
  0xa4   : > { %v1048_v14 = vsel %vm422_vm0, 1.0, %v1529_v13  ;;  %v1066_v15 = vsel %vm475_vm1, 1.0, %v1529_v13 }
  0xa5   : > { %v425_v16 = vpack.c.bf16 %v1048_v14, %v1048_v14  ;;  %v478_v17 = vpack.c.bf16 %v1066_v15, %v1066_v15 }
  0xa7   : > { %1065 = vmatmul.msk.bf16.vlgmr.msra.gmra.mxu0 %vm450_vm2, %v425_v16  ;;  %1067 = vmatmul.msk.bf16.vlgmr.msra.gmra.mxu1 %vm450_vm2, %v478_v17 }
  0xa8   : > { %650 = vmatpush.bf16.msra.mxu0 %v641_v27  ;;  %v1223_v27 = vld [vmem:[#allocation8] sm:$0xff] }
  0xab   : > { %v559_v18 = vpop.permute.xlu0 %558 }
  0xac   : > { %vm560_vm3 = vcmp.eq.s32.totalorder %v559_v18, %v410_v10  ;;  %v620_v10 = vperm.slane %v407_v58, 1 }
  0xad   : > { %v1086_v19 = vsel %vm560_vm3, 1.0, %v1529_v13 }
  0xae   : > { %v563_v20 = vpack.c.bf16 %v1086_v19, %v1086_v19  ;;  %vm621_vm7 = vcmp.le.f32.partialorder %v619_v8, %v620_v10 }
  0xb0   : > { %1087 = vmatmul.msk.bf16.vlgmr.msra.gmra.mxu2 %vm450_vm2, %v563_v20 }
 0x124   : > { %v463_v28 = vpop.f32.mrf.mxu0  ;;  %v491_v29 = vpop.f32.mrf.mxu1 }
 0x125   : > { %v467_v30 = vpack.c.bf16 %v463_v28, %v463_v28  ;;  %v495_v31 = vpack.c.bf16 %v491_v29, %v491_v29 }
 0x127   : > { %1085 = vmatmul.msk.bf16.vlgmr.msra.gmra.mxu3 %vm512_vm5, %v467_v30  ;;  %1076 = vmatmul.msk.bf16.vlgmr.msrb.gmra.mxu0 %vm512_vm5, %v495_v31  ;;  %v813_v30 = vrot.slane %v407_v58, 3 }
 0x128   : > { %884 = vmatpush.bf16.msra.mxu3 %v1230_v59 }
 0x12c   : > { %v465_v32 = vpop.f32.mrf.mxu0  ;;  %v493_v33 = vpop.f32.mrf.mxu1  ;;  %885 = vmatpush.bf16.msra.mxu3 %v1229_v62 }
 0x130   : > { %886 = vmatpush.bf16.msra.mxu3 %v1228_v2 }
 0x133   : > { %v576_v36 = vpop.f32.mrf.mxu2 }
 0x134   : > { %v580_v37 = vpack.c.bf16 %v576_v36, %v576_v36  ;;  %887 = vmatpush.bf16.msra.mxu3 %v1227_v11 }
 0x137   : > { %1096 = vmatmul.msk.bf16.vlgmr.msrb.gmra.mxu3 %vm512_vm5, %v580_v37  ;;  %1097 = vmatmul.msk.bf16.vlgmr.msra.gmra.mxu0 %vm635_vm6, %v630_v35  ;;  %v882_v37 = vrot.slane %v407_v58, 4 }
 0x138   : > { %888 = vmatpush.bf16.msra.mxu3 %v1226_v24 }
 0x13b   : > { %v578_v38 = vpop.f32.mrf.mxu2 }
 0x13c   : > { %889 = vmatpush.bf16.msra.mxu3 %v1225_v25 }
 0x140   : > { %890 = vmatpush.bf16.msra.mxu3 %v1224_v26 }
 0x144   : > { %891 = vmatpush.bf16.msra.mxu3 %v1223_v27 }
 0x1a4   : > { %v525_v51 = vpop.f32.mrf.mxu0 }
 0x1aa   : > { %v553_v56 = vpop.f32.mrf.mxu3 }
 0x1ab   : > { %v554_v4 = vadd.f32 %v553_v56, %v525_v51 }
 0x1ac   : > { %v527_v57 = vpop.f32.mrf.mxu0 }
 0x1b2   : > { %v555_v61 = vpop.f32.mrf.mxu3 }
 0x1b4   : > { %v652_v63 = vpop.f32.mrf.mxu0 }
 0x1b5   : > { %v653_v0 = vadd.f32 %v652_v63, %v633_v60 }
 0x1b7   : > { %v656_v3 = vmax.f32 %v653_v0, 0.0 }
 0x1b9   : > { %v674_v6 = vpack.c.bf16 %v656_v3, %v656_v3 }
 0x1ba   : > { %v609_v7 = vpop.f32.mrf.mxu3 }
 0x1bb   : > { %v613_v12 = vadd.f32 %v609_v7, %v554_v4  ;;  %747 = vmatmul.bf16.vlgmr.msrb.gmra.mxu1 %v674_v6 }
 0x1bc   : > { %v654_v13 = vpop.f32.mrf.mxu0 }
 0x1bd   : > { %v615_v14 = vadd.f32 %v614_v5, %v613_v12 }
 0x1bf   : > { %v616_v15 = vmax.f32 %v615_v14, 0.0 }
 0x1c1   : > { %v622_v16 = vsel %vm621_vm7, %v616_v15, -1e+30 }
 0x1c2   : > { %v623_v9 = vrot.slane %v622_v16, 4  ;;  %v611_v17 = vpop.f32.mrf.mxu3 }
 0x1c4   : > { %v624_v18 = vmax.f32 %v622_v16, %v623_v9 }
 0x1c6   : > { %v625_v19 = vrot.slane %v624_v18, 2 }
 0x1c8   : > { %v626_v20 = vmax.f32 %v624_v18, %v625_v19 }
 0x1ca   : > { %v627_v21 = vrot.slane %v626_v20, 1 }
 0x1cc   : > { %v628_v22 = vmax.f32 %v626_v20, %v627_v21 }
 0x1ce   : > { %v657_v23 = vpack.c.bf16 %v628_v22, %v628_v22 }
 0x1d0   : > { %808 = vmatmul.bf16.vlgmr.msrb.gmra.mxu2 %v657_v23 }
 0x238   : > { %v748_v28 = vpop.f32.mrf.mxu1 }
 0x240   : > { %v750_v29 = vpop.f32.mrf.mxu1 }
 0x253   : > { %v809_v31 = vpop.f32.mrf.mxu2 }
 0x254   : > { %v810_v32 = vadd.f32 %v809_v31, %v748_v28 }
 0x256   : > { %v815_v33 = vadd.f32 %v813_v30, %v810_v32 }
 0x258   : > { %v816_v34 = vmax.f32 %v815_v33, 0.0 }
 0x25a   : > { %v817_v35 = vpack.c.bf16 %v816_v34, %v816_v34 }
 0x25b   : > { %v811_v36 = vpop.f32.mrf.mxu2 }
 0x25c   : > { %892 = vmatmul.bf16.vlgmr.msra.gmra.mxu3 %v817_v35 }
 0x2df   : > { %v893_v38 = vpop.f32.mrf.mxu3 }
 0x2e0   : > { %v894_v39 = vadd.f32 %v893_v38, %v882_v37 }
 0x2e2   : > { %v1194_v40 = vmul.f32 -1.442695, %v894_v39 }
 0x2e4   : > { %1320 = vpow2.f32 %v1194_v40 }
 0x2e7   : > { %v895_v41 = vpop.f32.mrf.mxu3 }
 0x2ea   : > { %v1321_v42 = vpop.eup %1320 }
 0x2eb   : > { %v900_v43 = vadd.f32 1.0, %v1321_v42 }
 0x2ed   : > { %1322 = vrcp.f32 %v900_v43  ;;  %v912_v47 = vand.u32 2147483648, %v900_v43  ;;  %v910_v49 = vand.u32 2147483647, %v900_v43  ;;  %vm906_vm9 = vweird.f32 %v900_v43 }
 0x2ef   : > { %v913_v51 = vor.u32 1.1754944e-38, %v912_v47  ;;  %vm911_vm11 = vcmp.eq.f32.partialorder %v910_v49, 8.507059e+37 }
 0x2f3   : > { %v1323_v44 = vpop.eup %1322 }
 0x2f4   : > { %v902_v45 = vmul.f32 %v1323_v44, %v900_v43  ;;  %vm907_vm8 = vweird.f32 %v1323_v44 }
 0x2f5   : > { %vm908_vm10 = vmor %vm906_vm9, %vm907_vm8 }
 0x2f6   : > { %v903_v46 = vsub.f32 1.0, %v902_v45 }
 0x2f8   : > { %v904_v48 = vmul.f32 %v1323_v44, %v903_v46 }
 0x2fa   : > { %v905_v50 = vadd.f32 %v1323_v44, %v904_v48 }
 0x2fc   : > { %v909_v52 = vsel %vm908_vm10, %v1323_v44, %v905_v50 }
 0x2fd   : > { %v914_v53 = vsel %vm911_vm11, %v913_v51, %v909_v52 }
 0x2fe   : > { %916 = vst [vmem:[%s398_s6] sm:$0x1] %v914_v53 }
 0x2ff   : > { %1471 = shalt.err (!%p1468_p8)
}
 0x300   : > { %1247 = dma.vmem_to_hbm [thread:$0]  (%p1618_p5), %s929_s11, 16, %s931_s15, %s918_s18  }
 0x301 PF: > { %p1274_p9 = scmp.ge.s32.totalorder %s1518_s12, 2  ;;  %s942_s23 = sand.u32 1, %s1506_s30  }
 0x302   : > { %s943_s25 = scalar_lea.sflag [#allocation4], %s942_s23 }
 0x303   : > { %p1263_p10 = pnand %p1274_p9, %p1622_p6 }
 0x305   : > { %p1264_p11 = pneg %p1263_p10 }
 0x307   : > { %1501 = dma.done.wait (%p1264_p11), %s943_s25, 16  }
 0x308   : > { %1503 = vsyncadd (%p1264_p11), %s943_s25, 4294967280  ;;  %s1778_s12 = sld [smem:[#allocation16_spill]]  ;;  %s1781_s30 = smov %s1510_s10 }
 0x309   : > { %s1779_s28 = sld [smem:[#allocation15_spill]] }
 0x30a   : > { %s1780_s11 = sld [smem:[#allocation17_spill]] }
 0x30e   : > { %p22_p12 = scmp.ge.s32.totalorder %s1778_s12, 4  }
 0x30f   : > { %s1782_s10 = smov %s1779_s28 }
 0x310   :  { %24 = sbr.rel (!%p22_p12) target bundleno = 9 (0x9), region = 111 }
 0x315   :  { %948 = vsyncpa [#allocation3], 1 }
 0x316   :  { %950 = vsyncpa [#allocation3 + $0x1], 1 }
 0x317   :  { %951 = vsyncpa [#allocation6], 1 }
 0x318   :  { %952 = vsyncpa [#allocation9], 1 }
 0x319   :  { %953 = vsyncpa [#allocation4], 1 }
 0x31a   :  { %955 = vsyncpa [#allocation4 + $0x1], 1 }

</bundles_post_ra>
